<compile_context>
chip_gen: v5e
topology: v5e:2x2
jax: 0.10.0
libtpu: 0.0.40
codegen_flags: <defaults>
</compile_context>

<pallas_src>
import functools

import jax
import jax.numpy as jnp
from jax.experimental import pallas as pl
from jax.experimental.pallas import tpu as pltpu

CLAMP_MIN = 1e-4               # matches torch.clamp(prob, min=0.0001)
LANES = 1024                   # lane-dense last dim (multiple of 128)
MAX_TILE_ROWS = 512            # 512x1024 f32 tile = 2 MiB/buffer -> 4 MiB double-buffered
SMALL_INPUT_ELEMS = 64 * 1024  # below this, XLA's fused reduce beats a kernel launch


def _round_up(x: int, m: int) -> int:
    return ((x + m - 1) // m) * m


def _nll_kernel(x_ref, out_ref, acc_ref, *, true_count):
    i = pl.program_id(0)

    @pl.when(i == 0)
    def _init():
        acc_ref[...] = jnp.zeros_like(acc_ref)

    x = x_ref[...].astype(jnp.float32)                       # upcast after load (bf16 ok)
    logp = jnp.log(jnp.maximum(x, jnp.float32(CLAMP_MIN)))   # clamp(min) + log (EUP)
    tr, lanes = logp.shape
    # Fold (tile_r, LANES) -> (8, LANES) with pure VPU adds between full vregs.
    # The reshape only splits the leading dim, so there is no layout movement.
    acc_ref[...] += jnp.sum(logp.reshape(tr // 8, 8, lanes), axis=0)

    @pl.when(i == pl.num_programs(0) - 1)
    def _finalize():
        total = jnp.sum(acc_ref[...])                        # single cross-lane reduce, once
        out_ref[0, 0] = -(total / jnp.float32(true_count))


def _nll_reference(prob: jax.Array) -> jax.Array:
    # pure-JAX reference (mirrors the PyTorch forward)
    return -jnp.mean(jnp.log(jnp.clip(prob.astype(jnp.float32), CLAMP_MIN, None)))


def custom_nll_loss(prob: jax.Array, *, use_pallas=None) -> jax.Array:
    """Pallas equivalent of CustomNllLoss(reduction='mean')(prob)."""
    prob = jnp.asarray(prob)
    n = prob.size
    if use_pallas is None:
        use_pallas = n >= SMALL_INPUT_ELEMS
    if not use_pallas:
        # Launch + DMA overhead dwarfs the work for small tensors.
        return _nll_reference(prob)

    # ---- lane-dense slab: flatten, pad tail with 1.0 (log(1)=0), view (rows, LANES)
    rows_needed = -(-n // LANES)
    tile_r = MAX_TILE_ROWS if rows_needed >= MAX_TILE_ROWS else _round_up(rows_needed, 8)
    rows = _round_up(rows_needed, tile_r)
    flat = prob.reshape(-1)                                  # keep input dtype (bf16 stays bf16)
    pad = rows * LANES - n
    if pad:
        flat = jnp.pad(flat, (0, pad), constant_values=1.0)
    slab = flat.reshape(rows, LANES)

    grid = (rows // tile_r,)
    kernel = functools.partial(_nll_kernel, true_count=n)

    out = pl.pallas_call(
        kernel,
        out_shape=jax.ShapeDtypeStruct((1, 1), jnp.float32),
        grid_spec=pltpu.PrefetchScalarGridSpec(
            num_scalar_prefetch=0,
            grid=grid,
            in_specs=[pl.BlockSpec((tile_r, LANES), lambda i: (i, 0))],
            out_specs=pl.BlockSpec(memory_space=pltpu.MemorySpace.SMEM),  # resident scalar
            scratch_shapes=[pltpu.VMEM((8, LANES), jnp.float32)],
        ),
        compiler_params=pltpu.CompilerParams(
            dimension_semantics=("arbitrary",),              # reduction axis
            vmem_limit_bytes=32 * 1024 * 1024,               # safe on v5e/v6e/v7x
        ),
    )(slab)
    return out[0, 0]


if __name__ == "__main__":
    key = jax.random.PRNGKey(0)
    k1, k2 = jax.random.split(key)

    # Small shape consistent with the module: (batch=2, num_modes=8) softmax output.
    logits_small = jax.random.normal(k1, (2, 8), dtype=jnp.float32)
    prob_small = jax.nn.softmax(logits_small, axis=-1)
    ref_small = jax.block_until_ready(_nll_reference(prob_small))

    # Force the Pallas path so the kernel itself is exercised and checked.
    loss_small = jax.block_until_ready(custom_nll_loss(prob_small, use_pallas=True))
    assert jnp.allclose(loss_small, ref_small, rtol=1e-5, atol=1e-6), (loss_small, ref_small)

    # Auto dispatch on the tiny input uses the pure-JAX fallback (same result).
    loss_auto = jax.block_until_ready(custom_nll_loss(prob_small))
    assert jnp.allclose(loss_auto, ref_small, rtol=1e-5, atol=1e-6), (loss_auto, ref_small)

    # Larger case: crosses the threshold and runs a multi-step (grid=(2,)) pipelined
    # reduction, exercising init / accumulate / finalize across grid iterations.
    logits_big = jax.random.normal(k2, (131072, 8), dtype=jnp.float32)
    prob_big = jax.nn.softmax(logits_big, axis=-1)
    loss_big = jax.block_until_ready(custom_nll_loss(prob_big))
    ref_big = jax.block_until_ready(_nll_reference(prob_big))
    assert jnp.allclose(loss_big, ref_big, rtol=1e-4, atol=1e-5), (loss_big, ref_big)

    print("KERNEL_OK")
</pallas_src>

<mosaic_0001>
module attributes {stable_mosaic.version = 11 : i64} {
  func.func @_nll_kernel(%arg0: i32, %arg1: memref<8x1024xf32, #tpu.memory_space<vmem>>, %arg2: memref<1x1xf32, #tpu.memory_space<smem>>, %arg3: memref<8x1024xf32, #tpu.memory_space<vmem>>) attributes {dimension_semantics = [#tpu.dimension_semantics<arbitrary>], iteration_bounds = array<i64: 1>, scalar_prefetch = 0 : i64, scratch_operands = 1 : i64, tpu.core_type = #tpu.core_type<tc>, window_params = [{transform_indices = @transform_0, window_bounds = array<i64: 8, 1024>}, {transform_indices = @transform_1, window_bounds = array<i64: 1, 1>}]} {
    %c0_i32 = arith.constant 0 : i32
    %0 = arith.cmpi eq, %arg0, %c0_i32 : i32
    %1 = arith.extui %0 : i1 to i32
    %c0_i32_0 = arith.constant 0 : i32
    %2 = arith.cmpi ne, %1, %c0_i32_0 : i32
    scf.if %2 {
      %cst_9 = arith.constant 0.000000e+00 : f32
      %15 = vector.broadcast %cst_9 : f32 to vector<8x1024xf32>
      %c0_10 = arith.constant 0 : index
      %c0_11 = arith.constant 0 : index
      %16 = vector.load %arg3[%c0_10, %c0_11] : memref<8x1024xf32, #tpu.memory_space<vmem>>, vector<8x1024xf32>
      tpu.vector_store %arg3[%c0_10, %c0_11], %15 {strides = array<i32>} : memref<8x1024xf32, #tpu.memory_space<vmem>>, vector<8x1024xf32>,
    } else {
    }
    %c0 = arith.constant 0 : index
    %c0_1 = arith.constant 0 : index
    %3 = vector.load %arg1[%c0, %c0_1] : memref<8x1024xf32, #tpu.memory_space<vmem>>, vector<8x1024xf32>
    %cst = arith.constant 9.99999974E-5 : f32
    %4 = vector.broadcast %cst : f32 to vector<8x1024xf32>
    %5 = arith.maximumf %3, %4 : vector<8x1024xf32>
    %6 = math.log %5 : vector<8x1024xf32>
    %c0_2 = arith.constant 0 : index
    %c0_3 = arith.constant 0 : index
    %7 = vector.load %arg3[%c0_2, %c0_3] : memref<8x1024xf32, #tpu.memory_space<vmem>>, vector<8x1024xf32>
    %8 = vector.shape_cast %6 : vector<8x1024xf32> to vector<1x8x1024xf32>
    %cst_4 = arith.constant dense<0.000000e+00> : vector<8x1024xf32>
    %9 = vector.multi_reduction <add>, %8, %cst_4 [0] : vector<1x8x1024xf32> to vector<8x1024xf32>
    %10 = arith.addf %7, %9 : vector<8x1024xf32>
    %c0_5 = arith.constant 0 : index
    %c0_6 = arith.constant 0 : index
    %11 = vector.load %arg3[%c0_5, %c0_6] : memref<8x1024xf32, #tpu.memory_space<vmem>>, vector<8x1024xf32>
    tpu.vector_store %arg3[%c0_5, %c0_6], %10 {strides = array<i32>} : memref<8x1024xf32, #tpu.memory_space<vmem>>, vector<8x1024xf32>,
    %c0_i32_7 = arith.constant 0 : i32
    %12 = arith.cmpi eq, %arg0, %c0_i32_7 : i32
    %13 = arith.extui %12 : i1 to i32
    %c0_i32_8 = arith.constant 0 : i32
    %14 = arith.cmpi ne, %13, %c0_i32_8 : i32
    scf.if %14 {
      %c0_9 = arith.constant 0 : index
      %c0_10 = arith.constant 0 : index
      %15 = vector.load %arg3[%c0_9, %c0_10] : memref<8x1024xf32, #tpu.memory_space<vmem>>, vector<8x1024xf32>
      %16 = vector.shape_cast %15 : vector<8x1024xf32> to vector<1x8x1024xf32>
      %cst_11 = arith.constant dense<0.000000e+00> : vector<1xf32>
      %17 = vector.multi_reduction <add>, %16, %cst_11 [1, 2] : vector<1x8x1024xf32> to vector<1xf32>
      %18 = vector.shape_cast %17 : vector<1xf32> to vector<1x1x1xf32>
      %19 = vector.extract %18[0, 0, 0] : f32 from vector<1x1x1xf32>
      %cst_12 = arith.constant 1.600000e+01 : f32
      %20 = arith.divf %19, %cst_12 : f32
      %cst_13 = arith.constant 0.000000e+00 : f32
      %21 = arith.subf %cst_13, %20 : f32
      %c0_14 = arith.constant 0 : index
      %c0_15 = arith.constant 0 : index
      %22 = memref.load %arg2[%c0_14, %c0_15] : memref<1x1xf32, #tpu.memory_space<smem>>
      memref.store %21, %arg2[%c0_14, %c0_15] : memref<1x1xf32, #tpu.memory_space<smem>>
    } else {
    }
    return
  }
  func.func @transform_0(%arg0: i32) -> (i32, i32) {
    %c0_i32 = arith.constant 0 : i32
    %c0_i32_0 = arith.constant 0 : i32
    return %arg0, %c0_i32 : i32, i32
  }
  func.func @transform_1(%arg0: i32) -> (i32, i32) {
    %c0_i32 = arith.constant 0 : i32
    %c0_i32_0 = arith.constant 0 : i32
    %c0_i32_1 = arith.constant 0 : i32
    return %c0_i32, %c0_i32_0 : i32, i32
  }
}

</mosaic_0001>

<bundles_post_ra>
// kernel: tpu_custom_call.1
= control target key start
LH: loop header
LB: loop body
LE: loop exit
PB: predicated region body
PF: predicated region fallthrough
CT: control target
= control target key end

     0   :  { %6 = vsyncpa [#allocation4], 0  ;;  %s238_s0 = inlined_call_operand.hbm [shape: f32[8,1024], index: 0, kind: input, shape index: {}]   ;;  %s239_s1 = inlined_call_operand.hbm [shape: f32[1,1], index: 1, kind: output, shape index: {}]  }
   0x1   :  { %7 = vsyncpa [#allocation5], 0  ;;  %s13_s8 = sshll.u32 %s238_s0, 4  ;;  %s219_s9 = smov [#allocation3]   ;;  %s14_s8 = int_to_ptr.hbm [resolvable:$true] %s13_s8 }
   0x2   :  { %s15_s10 = sshll.u32 %s219_s9, 4  ;;  %s16_s10 = int_to_ptr.vmem [resolvable:$true] %s15_s10 }
   0x3   :  { %18 = dma.hbm_to_vmem [thread:$0]  %s14_s8, 1024, %s16_s10, [#allocation4]  }
   0x4   :  { %215 = dma.done.wait [#allocation4], 1024  }
   0x5   :  { %216 = vsyncadd [#allocation4], 4294966272  ;;  %v35_v0 = vld [vmem:[#allocation3] sm:$0xff]  ;;  %v36_v1 = vld [vmem:[#allocation3 + $0x8] sm:$0xff]  ;;  %v220_v39 = vmov 16.0   ;;  %s143_s13 = sshll.u32 %s239_s1, 4  ;;  %s144_s13 = int_to_ptr.hbm [resolvable:$true] %s143_s13 }
   0x6   :  { %v37_v2 = vld [vmem:[#allocation3 + $0x10] sm:$0xff]  ;;  %v38_v3 = vld [vmem:[#allocation3 + $0x18] sm:$0xff]  ;;  %v39_v4 = vld [vmem:[#allocation3 + $0x20] sm:$0xff]  ;;  %v43_v6 = vmax.f32 %v35_v0, 0.0001  ;;  %s221_s17 = smov [#allocation6]  }
   0x7   :  { %v40_v5 = vld [vmem:[#allocation3 + $0x28] sm:$0xff]  ;;  %v44_v7 = vmax.f32 %v36_v1, 0.0001  ;;  %v45_v8 = vmax.f32 %v37_v2, 0.0001  ;;  %v41_v9 = vld [vmem:[#allocation3 + $0x30] sm:$0xff] }
   0x8   :  { %v46_v10 = vmax.f32 %v38_v3, 0.0001  ;;  %v47_v11 = vmax.f32 %v39_v4, 0.0001  ;;  %161 = vlog2.f32 %v43_v6  ;;  %v48_v12 = vmax.f32 %v40_v5, 0.0001 }
   0x9   :  { %163 = vlog2.f32 %v44_v7  ;;  %v42_v13 = vld [vmem:[#allocation3 + $0x38] sm:$0xff]  ;;  %v49_v14 = vmax.f32 %v41_v9, 0.0001 }
   0xa   :  { %165 = vlog2.f32 %v45_v8  ;;  %v50_v15 = vmax.f32 %v42_v13, 0.0001 }
   0xb   :  { %167 = vlog2.f32 %v46_v10 }
   0xc   :  { %169 = vlog2.f32 %v47_v11 }
   0xd   :  { %171 = vlog2.f32 %v48_v12 }
   0xe   :  { %v162_v16 = vpop.eup %161  ;;  %173 = vlog2.f32 %v49_v14 }
   0xf   :  { %v164_v17 = vpop.eup %163  ;;  %v52_v18 = vmul.f32 0.6931472, %v162_v16  ;;  %175 = vlog2.f32 %v50_v15 }
  0x10   :  { %v166_v19 = vpop.eup %165  ;;  %v54_v20 = vmul.f32 0.6931472, %v164_v17  ;;  %177 = vrcp.f32 %v220_v39 }
  0x11   :  { %v168_v21 = vpop.eup %167  ;;  %v56_v22 = vmul.f32 0.6931472, %v166_v19 }
  0x12   :  { %v170_v23 = vpop.eup %169  ;;  %v58_v24 = vmul.f32 0.6931472, %v168_v21  ;;  %v110_v25 = vadd.f32 %v54_v20, %v52_v18 }
  0x13   :  { %v172_v26 = vpop.eup %171  ;;  %v60_v27 = vmul.f32 0.6931472, %v170_v23 }
  0x14   :  { %v111_v28 = vadd.f32 %v110_v25, %v56_v22  ;;  %v174_v29 = vpop.eup %173  ;;  %v62_v30 = vmul.f32 0.6931472, %v172_v26 }
  0x15   :  { %v176_v32 = vpop.eup %175  ;;  %v64_v33 = vmul.f32 0.6931472, %v174_v29 }
  0x16   :  { %v112_v31 = vadd.f32 %v111_v28, %v58_v24  ;;  %v66_v35 = vmul.f32 0.6931472, %v176_v32  ;;  %v178_v40 = vpop.eup %177 }
  0x17   :  { %v127_v41 = vmul.f32 16.0, %v178_v40  ;;  %vm131_vm0 = vweird.f32 %v178_v40 }
  0x18   :  { %v113_v34 = vadd.f32 %v112_v31, %v60_v27 }
  0x19   :  { %v128_v42 = vsub.f32 1.0, %v127_v41 }
  0x1a   :  { %v114_v36 = vadd.f32 %v113_v34, %v62_v30 }
  0x1b   :  { %v129_v46 = vmul.f32 %v178_v40, %v128_v42 }
  0x1c   :  { %v115_v37 = vadd.f32 %v114_v36, %v64_v33 }
  0x1d   :  { %v130_v49 = vadd.f32 %v178_v40, %v129_v46 }
  0x1e   :  { %v116_v38 = vadd.f32 %v115_v37, %v66_v35 }
  0x1f   :  { %v132_v52 = vsel %vm131_vm0, %v178_v40, %v130_v49 }
  0x20   :  { %117 = vadd.xlane.f32.xlu0 %v116_v38 }
  0x93   :  { %v118_v43 = vpop.xlane.xlu0 %117 }
  0x94   :  { %v119_v44 = vrot.slane %v118_v43, 4 }
  0x96   :  { %v120_v45 = vadd.f32 %v119_v44, %v118_v43 }
  0x98   :  { %v121_v47 = vrot.slane %v120_v45, 2 }
  0x9a   :  { %v122_v48 = vadd.f32 %v121_v47, %v120_v45 }
  0x9c   :  { %v123_v50 = vrot.slane %v122_v48, 1 }
  0x9e   :  { %v124_v51 = vadd.f32 %v123_v50, %v122_v48 }
  0xa0   :  { %154 = vpush %v124_v51 }
  0xa1   :  { %156 = vpush %v132_v52 }
  0xd1   :  { %s155_s0 = spop %154 }
  0xd2   :  { %s157_s14 = spop %156 }
  0xd3   :  { %s134_s15 = smul.f32 %s157_s14, %s155_s0 }
  0xd5   :  { %s135_s16 = ssub.f32 0.0, %s134_s15 }
  0xd7   :  { %137 = sst [smem:[#allocation6]] %s135_s16 }
  0xd8   :  { %146 = dma.smem_to_hbm %s221_s17, 16, %s144_s13, [#allocation5]  }
  0xd9   :  { %217 = dma.done.wait [#allocation5], 16  }
  0xda   :  { %218 = vsyncadd [#allocation5], 4294967280 }
  0xdb   :  { %151 = sfence }
  0xdc   :  { %152 = vsyncpa [#allocation4], 1 }
  0xdd   :  { %153 = vsyncpa [#allocation5], 1 }

</bundles_post_ra>
